<compile_context>
chip_gen: v6e
topology: v6e:2x2x1
jax: 0.10.0
libtpu: 0.0.40
codegen_flags: <defaults>
</compile_context>

<pallas_src>
import functools

import jax
import jax.numpy as jnp
from jax.experimental import pallas as pl
from jax.experimental.pallas import tpu as pltpu


# ---------------------------------------------------------------------------
# Shared helpers
# ---------------------------------------------------------------------------
def _apply_act(y, act):
    if act == "relu":
        return jnp.maximum(y, 0.0)
    if act == "sigmoid":
        return jax.nn.sigmoid(y)
    return y


def _conv_block(adj, x, wt, act):
    """act( adj @ x @ wt ) with the cheaper association picked statically.

    wt is already transposed: [F_in, F_out].
    """
    f_in, f_out = wt.shape
    if f_out <= f_in:
        # Contract the big N x N matmul against the narrower output dim.
        y = jnp.dot(adj,
                    jnp.dot(x, wt, preferred_element_type=jnp.float32),
                    preferred_element_type=jnp.float32)
    else:
        y = jnp.dot(jnp.dot(adj, x, preferred_element_type=jnp.float32),
                    wt, preferred_element_type=jnp.float32)
    return _apply_act(y, act)


# ---------------------------------------------------------------------------
# Path 1: fully fused LP kernel (small/medium graphs, everything in VMEM)
# ---------------------------------------------------------------------------
def _lp_fused_kernel(adj_ref, z_ref, w1t_ref, w2t_ref, res_ref, z1_ref):
    adj = adj_ref[...]
    # Layer 1: relu((g @ z) @ W1.T)   -- F_in < F_out, keep natural order.
    z1 = _conv_block(adj, z_ref[...], w1t_ref[...], "relu")
    z1_ref[...] = z1.astype(z1_ref.dtype)
    # Layer 2: sigmoid(g @ (z1 @ W2.T))  -- reassociated, F_out < F_in.
    res = _conv_block(adj, z1, w2t_ref[...], "sigmoid")
    res_ref[...] = res.astype(res_ref.dtype)


def lp_fused(g, z, w1t, w2t):
    n = g.shape[0]
    hid = w1t.shape[1]
    f_out = w2t.shape[1]
    vmem = pl.BlockSpec(memory_space=pltpu.MemorySpace.VMEM)
    return pl.pallas_call(
        _lp_fused_kernel,
        out_shape=(
            jax.ShapeDtypeStruct((n, f_out), z.dtype),  # res
            jax.ShapeDtypeStruct((n, hid), z.dtype),    # z1
        ),
        in_specs=[vmem, vmem, vmem, vmem],
        out_specs=(vmem, vmem),
    )(g, z, w1t, w2t)


# ---------------------------------------------------------------------------
# Path 2: tiled per-layer GraphConv (large graphs that do not fit VMEM)
# ---------------------------------------------------------------------------
def _graph_conv_tiled_kernel(adj_ref, x_ref, wt_ref, out_ref, acc_ref, *,
                             act, reassoc):
    k = pl.program_id(1)

    @pl.when(k == 0)
    def _():
        acc_ref[...] = jnp.zeros_like(acc_ref)

    if reassoc:
        # acc += adj_tile @ (x_tile @ wt)   (narrow F_out)
        part = jnp.dot(x_ref[...], wt_ref[...],
                       preferred_element_type=jnp.float32)
        acc_ref[...] += jnp.dot(adj_ref[...], part,
                                preferred_element_type=jnp.float32)
    else:
        # acc += (adj_tile @ x_tile) @ wt   (narrow F_in)
        part = jnp.dot(adj_ref[...], x_ref[...],
                       preferred_element_type=jnp.float32)
        acc_ref[...] += jnp.dot(part, wt_ref[...],
                                preferred_element_type=jnp.float32)

    @pl.when(k == pl.num_programs(1) - 1)
    def _():
        out_ref[...] = _apply_act(acc_ref[...], act).astype(out_ref.dtype)


def graph_conv_tiled(adj, x, wt, act, *, tm=512, tk=512,
                     vmem_limit_bytes=48 * 1024 * 1024):
    """act(adj @ x @ wt), tiled over rows (parallel) and the N-reduction (arbitrary)."""
    n = adj.shape[0]
    f_in = x.shape[1]
    f_out = wt.shape[1]

    # Pad N to tile multiples (zero rows/cols of adj keep the valid region exact).
    n_rows = pl.cdiv(n, tm) * tm
    n_cols = pl.cdiv(n, tk) * tk
    adj_p = jnp.zeros((n_rows, n_cols), adj.dtype).at[:n, :n].set(adj)
    x_p = jnp.zeros((n_cols, f_in), x.dtype).at[:n, :].set(x)

    reassoc = f_out <= f_in
    kernel = functools.partial(_graph_conv_tiled_kernel, act=act,
                               reassoc=reassoc)
    out = pl.pallas_call(
        kernel,
        out_shape=jax.ShapeDtypeStruct((n_rows, f_out), x.dtype),
        grid_spec=pltpu.PrefetchScalarGridSpec(
            num_scalar_prefetch=0,
            grid=(n_rows // tm, n_cols // tk),
            in_specs=[
                pl.BlockSpec((tm, tk), lambda i, k: (i, k)),
                pl.BlockSpec((tk, f_in), lambda i, k: (k, 0)),
                pl.BlockSpec((f_in, f_out), lambda i, k: (0, 0)),
            ],
            out_specs=pl.BlockSpec((tm, f_out), lambda i, k: (i, 0)),
            scratch_shapes=[pltpu.VMEM((tm, f_out), jnp.float32)],
        ),
        compiler_params=pltpu.CompilerParams(
            dimension_semantics=("parallel", "arbitrary"),
            vmem_limit_bytes=vmem_limit_bytes,
        ),
    )(adj_p, x_p, wt)
    return out[:n]


# ---------------------------------------------------------------------------
# LP forward
# ---------------------------------------------------------------------------
def lp_forward(g, z, w1, w2):
    """LP.forward: z1 = relu(g @ z @ W1.T); res = sigmoid(g @ z1 @ W2.T)."""
    # Hoist the weight transposes out of the kernels (layout plumbing).
    w1t = jnp.transpose(w1)  # [F_in, HID]
    w2t = jnp.transpose(w2)  # [HID, F_out]

    n = g.shape[0]
    f_in = z.shape[1]
    hid = w1.shape[0]
    f_out = w2.shape[0]

    # Static (shape-based) choice: fused whole-VMEM kernel when it comfortably
    # fits scoped VMEM on every TPU generation, otherwise tiled per-layer path.
    fused_bytes = 4 * (n * n + n * f_in + n * hid + n * f_out
                       + f_in * hid + hid * f_out)
    if fused_bytes <= 8 * 1024 * 1024:
        res, z1 = lp_fused(g, z, w1t, w2t)
    else:
        z1 = graph_conv_tiled(g, z, w1t, act="relu")
        res = graph_conv_tiled(g, z1, w2t, act="sigmoid")
    return res, z1


def xavier_uniform(key, shape, dtype=jnp.float32):
    # nn.init.xavier_uniform_ for Linear weight [fan_out, fan_in]
    fan_out, fan_in = shape
    bound = (6.0 / (fan_in + fan_out)) ** 0.5
    return jax.random.uniform(key, shape, dtype, minval=-bound, maxval=bound)


if __name__ == "__main__":
    N = 8          # number of graph nodes
    OUT_DIM = 4    # out_dim (input feature dim of z and final output dim)
    HID_DIM = 32   # hid_dim

    key = jax.random.PRNGKey(0)
    k_g, k_z, k_w1, k_w2 = jax.random.split(key, 4)

    g = jax.random.uniform(k_g, (N, N), jnp.float32)
    z = jax.random.normal(k_z, (N, OUT_DIM), jnp.float32)

    # res1 = GraphConv(out_dim, hid_dim) -> Linear weight [hid_dim, out_dim]
    w1 = xavier_uniform(k_w1, (HID_DIM, OUT_DIM))
    # res2 = GraphConv(hid_dim, out_dim) -> Linear weight [out_dim, hid_dim]
    w2 = xavier_uniform(k_w2, (OUT_DIM, HID_DIM))

    res, z1 = jax.jit(lp_forward)(g, z, w1, w2)
    jax.block_until_ready((res, z1))

    # Reference check in plain JAX (eval-mode PyTorch semantics).
    z1_ref = jnp.maximum((g @ z) @ w1.T, 0.0)
    res_ref = jax.nn.sigmoid((g @ z1_ref) @ w2.T)
    assert res.shape == (N, OUT_DIM) and z1.shape == (N, HID_DIM)
    assert jnp.allclose(z1, z1_ref, atol=1e-5, rtol=1e-5)
    assert jnp.allclose(res, res_ref, atol=1e-5, rtol=1e-5)

    print("KERNEL_OK")
</pallas_src>

<mosaic_0001>
module attributes {stable_mosaic.version = 11 : i64} {
  func.func @_lp_fused_kernel(%arg0: memref<8x8xf32, #tpu.memory_space<vmem>>, %arg1: memref<8x4xf32, #tpu.memory_space<vmem>>, %arg2: memref<4x32xf32, #tpu.memory_space<vmem>>, %arg3: memref<32x4xf32, #tpu.memory_space<vmem>>, %arg4: memref<8x4xf32, #tpu.memory_space<vmem>>, %arg5: memref<8x32xf32, #tpu.memory_space<vmem>>) attributes {dimension_semantics = [], scalar_prefetch = 0 : i64, scratch_operands = 0 : i64, tpu.core_type = #tpu.core_type<tc>} {
    %c0 = arith.constant 0 : index
    %c0_0 = arith.constant 0 : index
    %0 = vector.load %arg0[%c0, %c0_0] : memref<8x8xf32, #tpu.memory_space<vmem>>, vector<8x8xf32>
    %c0_1 = arith.constant 0 : index
    %c0_2 = arith.constant 0 : index
    %1 = vector.load %arg1[%c0_1, %c0_2] : memref<8x4xf32, #tpu.memory_space<vmem>>, vector<8x4xf32>
    %c0_3 = arith.constant 0 : index
    %c0_4 = arith.constant 0 : index
    %2 = vector.load %arg2[%c0_3, %c0_4] : memref<4x32xf32, #tpu.memory_space<vmem>>, vector<4x32xf32>
    %cst = arith.constant dense<0.000000e+00> : vector<8x4xf32>
    %3 = tpu.matmul %0, %1, %cst {dimension_numbers = #tpu.dot_dimension_numbers<[1], [0], [0], [1], [0, 0, 1, 1], [], []>} : vector<8x8xf32>, vector<8x4xf32>, vector<8x4xf32> -> vector<8x4xf32>
    %cst_5 = arith.constant dense<0.000000e+00> : vector<8x32xf32>
    %4 = tpu.matmul %3, %2, %cst_5 {dimension_numbers = #tpu.dot_dimension_numbers<[1], [0], [0], [1], [0, 0, 1, 1], [], []>} : vector<8x4xf32>, vector<4x32xf32>, vector<8x32xf32> -> vector<8x32xf32>
    %cst_6 = arith.constant 0.000000e+00 : f32
    %5 = vector.broadcast %cst_6 : f32 to vector<8x32xf32>
    %6 = arith.maximumf %4, %5 : vector<8x32xf32>
    %c0_7 = arith.constant 0 : index
    %c0_8 = arith.constant 0 : index
    %7 = vector.load %arg5[%c0_7, %c0_8] : memref<8x32xf32, #tpu.memory_space<vmem>>, vector<8x32xf32>
    tpu.vector_store %arg5[%c0_7, %c0_8], %6 {strides = array<i32>} : memref<8x32xf32, #tpu.memory_space<vmem>>, vector<8x32xf32>,
    %c0_9 = arith.constant 0 : index
    %c0_10 = arith.constant 0 : index
    %8 = vector.load %arg3[%c0_9, %c0_10] : memref<32x4xf32, #tpu.memory_space<vmem>>, vector<32x4xf32>
    %cst_11 = arith.constant dense<0.000000e+00> : vector<8x4xf32>
    %9 = tpu.matmul %6, %8, %cst_11 {dimension_numbers = #tpu.dot_dimension_numbers<[1], [0], [0], [1], [0, 0, 1, 1], [], []>} : vector<8x32xf32>, vector<32x4xf32>, vector<8x4xf32> -> vector<8x4xf32>
    %cst_12 = arith.constant dense<0.000000e+00> : vector<8x4xf32>
    %10 = tpu.matmul %0, %9, %cst_12 {dimension_numbers = #tpu.dot_dimension_numbers<[1], [0], [0], [1], [0, 0, 1, 1], [], []>} : vector<8x8xf32>, vector<8x4xf32>, vector<8x4xf32> -> vector<8x4xf32>
    %11 = arith.negf %10 : vector<8x4xf32>
    %12 = math.exp %11 : vector<8x4xf32>
    %cst_13 = arith.constant 1.000000e+00 : f32
    %13 = vector.broadcast %cst_13 : f32 to vector<8x4xf32>
    %14 = arith.addf %13, %12 : vector<8x4xf32>
    %15 = arith.divf %13, %14 : vector<8x4xf32>
    %c0_14 = arith.constant 0 : index
    %c0_15 = arith.constant 0 : index
    %16 = vector.load %arg4[%c0_14, %c0_15] : memref<8x4xf32, #tpu.memory_space<vmem>>, vector<8x4xf32>
    tpu.vector_store %arg4[%c0_14, %c0_15], %15 {strides = array<i32>} : memref<8x4xf32, #tpu.memory_space<vmem>>, vector<8x4xf32>,
    return
  }
}

</mosaic_0001>

<bundles_post_ra>
// kernel: lp_forward.1
= control target key start
LH: loop header
LB: loop body
LE: loop exit
PB: predicated region body
PF: predicated region fallthrough
CT: control target
= control target key end

     0   :  { %vm23_vm0 = vcmask 64512   ;;  %v422_v2 = vmov 0.0   ;;  %vm423_vm1 = vmmov 0   ;;  %s490_s0 = inlined_call_operand.vmem [shape: f32[8,8], index: 0, kind: input, shape index: {}]   ;;  %s491_s1 = inlined_call_operand.vmem [shape: f32[8,4], index: 1, kind: input, shape index: {}]   ;;  %s492_s2 = inlined_call_operand.vmem [shape: f32[4,32], index: 2, kind: input, shape index: {}]   ;;  %s493_s3 = inlined_call_operand.vmem [shape: f32[32,4], index: 3, kind: input, shape index: {}]   ;;  %s494_s4 = inlined_call_operand.vmem [shape: f32[8,4], index: 4, kind: output, shape index: {0}]   ;;  %s495_s5 = inlined_call_operand.hbm [shape: f32[8,32], index: 5, kind: output, shape index: {1}]  }
   0x1   :  { %v21_v0 = vld [vmem:[%s491_s1] sm:$0xff]  ;;  %367 = vmatprep.subr.mxu0 %v422_v2  ;;  %369 = vmatprep.mubr.msk.f32.mxu0 %vm423_vm1, %v422_v2 }
   0x2   :  { %v20_v1 = vld [vmem:[%s490_s0] sm:$0xff] }
   0x3   :  { %11 = vsyncpa [#allocation3], 0  ;;  %368 = vmatpush3.msra.mxu0 %v21_v0  ;;  %372 = vmatprep.subr.mxu1 %v422_v2  ;;  %v22_v3 = vld [vmem:[%s492_s2] sm:$0xf]  ;;  %vm101_vm2 = vcmask 1043456   ;;  %v181_v4 = vld [vmem:[%s493_s3 + $0x18] sm:$0xff] }
   0x4   :  { %370 = vmatmul.mubr.msk.f32.vlgmr.msra.gmra.mxu0 %vm23_vm0, %v20_v1  ;;  %374 = vmatprep.mubr.msk.f32.mxu1 %vm423_vm1, %v422_v2  ;;  %v180_v5 = vld [vmem:[%s493_s3 + $0x10] sm:$0xff]  ;;  %vm97_vm3 = vcmask 31744   ;;  %v179_v8 = vld [vmem:[%s493_s3 + $0x8] sm:$0xff]  ;;  %v178_v9 = vld [vmem:[%s493_s3] sm:$0xff]  ;;  %vm176_vm4 = vcmask 261120   ;;  %s424_s29 = smov [#allocation2]  }
   0x5   :  { %377 = vmatprep.subr.mxu0 %v422_v2  ;;  %385 = vmatprep.mubr.msk.f32.mxu0 %vm423_vm1, %v422_v2  ;;  %s340_s30 = sshll.u32 %s424_s29, 4  ;;  %s341_s30 = int_to_ptr.vmem [resolvable:$true] %s340_s30 }
   0x6   :  { %373 = vmatpush3.msk.msra.mxu1 %vm101_vm2, %v22_v3  ;;  %378 = vmatpush3.msra.mxu0 %v181_v4  ;;  %s400_s6 = scalar_lea.vmem %s341_s30, 128  ;;  %p405_p1 = scmp.lt.s32.totalorder %s341_s30, %s341_s30 }
   0x7   :  { %388 = vmatprep.subr.mxu1 %v422_v2  ;;  %379 = vmatprep.subr.mxu0 %v422_v2  ;;  %p401_p0 = scmp.ne.s32.totalorder %s341_s30, %s400_s6  ;;  %p406_p2 = scmp.lt.s32.totalorder %s400_s6, %s400_s6 }
   0x8   :  { %380 = vmatpush3.msra.mxu0 %v180_v5 }
   0x9   :  { %381 = vmatprep.subr.mxu0 %v422_v2  ;;  %p407_p3 = por %p406_p2, %p405_p1 }
   0xa   :  { %382 = vmatpush3.msra.mxu0 %v179_v8 }
   0xb   :  { %383 = vmatprep.subr.mxu0 %v422_v2  ;;  %p408_p4 = pnand %p407_p3, %p401_p0 }
   0xc   :  { %384 = vmatpush3.msra.mxu0 %v178_v9 }
  0xc4   :  { %v93_v6 = vpop.f32.mrf.mxu0 }
  0xc5   :  { %375 = vmatmul.mubr.msk.f32.vlgmr.msra.gmra.mxu1 %vm97_vm3, %v93_v6 }
  0xc6   :  { %v371_v7 = vpop.f32.mrf.mxu0  ;;  %390 = vmatprep.mubr.msk.f32.mxu1 %vm423_vm1, %v422_v2 }
 0x185   :  { %v171_v10 = vpop.f32.mrf.mxu1 }
 0x186   :  { %v175_v11 = vmax.f32 %v171_v10, 0.0 }
 0x187   :  { %v376_v12 = vpop.f32.mrf.mxu1 }
 0x188   :  { %386 = vmatmul.mubr.msk.f32.vlgmr.msra.gmra.mxu0 %vm176_vm4, %v175_v11  ;;  %177 = vst.msk [vmem:[#allocation2] sm:$0xff] %vm176_vm4, %v175_v11 }
 0x248   :  { %v251_v13 = vpop.f32.mrf.mxu0 }
 0x249   :  { %389 = vmatpush3.msra.mxu1 %v251_v13 }
 0x24a   :  { %v387_v14 = vpop.f32.mrf.mxu0  ;;  %391 = vmatmul.mubr.msk.f32.vlgmr.msra.gmra.mxu1 %vm23_vm0, %v20_v1 }
 0x24b   :  { %411 = shalt.err (!%p408_p4)
}
 0x24c   :  { %343 = dma.vmem_to_hbm [thread:$0]  %s341_s30, 128, %s495_s5, [#allocation3]  }
 0x30a   :  { %v321_v15 = vpop.f32.mrf.mxu1 }
 0x30b   :  { %v355_v16 = vmul.f32 -1.442695, %v321_v15 }
 0x30c   :  { %v392_v17 = vpop.f32.mrf.mxu1 }
 0x30d   :  { %396 = vpow2.f32 %v355_v16 }
 0x31a   :  { %v397_v18 = vpop.eup %396 }
 0x31b   :  { %v328_v19 = vadd.f32 1.0, %v397_v18 }
 0x31d   :  { %398 = vrcp.f32 %v328_v19 }
 0x32a   :  { %v399_v20 = vpop.eup %398 }
 0x32b   :  { %331 = vst.msk [vmem:[%s494_s4] sm:$0xff] %vm97_vm3, %v399_v20 }
 0x32c   :  { %420 = dma.done.wait [#allocation3], 128  }
 0x32d   :  { %421 = vsyncadd [#allocation3], 4294967168 }
 0x32e   :  { %349 = vsyncpa [#allocation3], 1 }

</bundles_post_ra>
